<compile_context>
chip_gen: v6e
topology: v6e:2x2x1
jax: 0.10.0
libtpu: 0.0.40
codegen_flags: <defaults>
</compile_context>

<pallas_src>
import functools
import math

import jax
import jax.numpy as jnp
from jax.experimental import pallas as pl
from jax.experimental.pallas import tpu as pltpu

_LANE = 128
_SUBLANE = 8


def _round_up(n, m):
    return ((n + m - 1) // m) * m


# ----------------------------------------------------------------------------
# Kernel
# ----------------------------------------------------------------------------
def _mlp_kernel(num_layers, negative_slope, *refs):
    # refs = (x_ref, w0, b0, w1, b1, ..., w{L-1}, b{L-1}, out_ref)
    x_ref = refs[0]
    out_ref = refs[-1]
    param_refs = refs[1:-1]

    h = x_ref[...]                                     # bf16 (tb, in_p)
    for i in range(num_layers):
        w = param_refs[2 * i][...]                     # bf16 (in_p, out_p), resident
        b = param_refs[2 * i + 1][...]                 # f32  (1, out_p) -> broadcasts
        # bf16 x bf16 on the MXU, f32 accumulation; bias add in f32.
        acc = jnp.dot(h, w, preferred_element_type=jnp.float32) + b
        if i + 1 < num_layers:
            # LeakyReLU in bf16 (halves intermediate footprint; inert on the
            # zero-padded lanes since LeakyReLU(0) == 0).
            h16 = acc.astype(jnp.bfloat16)
            h = jnp.where(h16 > 0, h16, negative_slope * h16)
        else:
            # Exact sigmoid on the last layer: exp on EUP, exact divide keeps
            # the output strictly inside (0, 1).
            h = 1.0 / (1.0 + jnp.exp(-acc))
    out_ref[...] = h.astype(out_ref.dtype)


# ----------------------------------------------------------------------------
# Parameter preparation (done once, outside the per-call hot path)
# ----------------------------------------------------------------------------
def prepare_generator_params(params, input_dim):
    """Pad weights/biases to lane multiples and cast weights to bf16, once.

    params: list of (W, b) with W: (in, out) f32, b: (out,) f32
    Returns a dict consumed by `generator_forward`.
    """
    dims = [input_dim] + [w.shape[1] for w, _ in params]
    dims_p = [_round_up(d, _LANE) for d in dims]

    weights, biases = [], []
    for li, (w, b) in enumerate(params):
        d_in, d_out = w.shape
        w_p = jnp.pad(w.astype(jnp.bfloat16),
                      ((0, dims_p[li] - d_in), (0, dims_p[li + 1] - d_out)))
        b_p = jnp.pad(b.astype(jnp.float32).reshape(1, -1),
                      ((0, 0), (0, dims_p[li + 1] - d_out)))
        weights.append(w_p)
        biases.append(b_p)

    return {
        "weights": weights,     # bf16, (in_p, out_p)
        "biases": biases,       # f32,  (1, out_p)
        "dims": dims,           # real feature sizes per layer boundary
        "dims_p": dims_p,       # padded feature sizes
    }


def _is_v7x():
    try:
        kind = jax.devices()[0].device_kind.lower()
    except Exception:
        return False
    return "7" in kind


def _pick_batch_tile(batch, block_rows):
    if _is_v7x():
        # 2 TensorCores + 64 MiB/TC: aim for >=4 grid steps so megacore can
        # split the batch and the DMA pipeline has something to overlap; cap
        # the tile at 256 rows for the smaller VMEM budget.
        tb = min(min(block_rows, 256),
                 _round_up(max(1, math.ceil(batch / 4)), _SUBLANE))
    else:
        # Single TC (v5e/v6e): extra grid steps are pure per-step overhead;
        # keep the tile as tall as allowed.
        tb = min(block_rows, _round_up(batch, _SUBLANE))
    return max(tb, _SUBLANE)


def _resident_spec(shape):
    """BlockSpec for a parameter that stays resident across grid steps."""
    try:
        return pl.BlockSpec(shape, lambda i: (0, 0),
                            pipeline_mode=pl.Buffered(1))
    except (TypeError, AttributeError):
        # Fallback for Pallas versions without pipeline_mode / Buffered.
        return pl.BlockSpec(shape, lambda i: (0, 0))


# ----------------------------------------------------------------------------
# Forward wrapper
# ----------------------------------------------------------------------------
def generator_forward(x, prepared, *, negative_slope=0.01, block_rows=512,
                      out_dtype=jnp.float32):
    """Run the Generator MLP as a single Pallas kernel.

    x:        (batch, input_dim) float array
    prepared: output of `prepare_generator_params`
    """
    weights = prepared["weights"]
    biases = prepared["biases"]
    dims = prepared["dims"]
    dims_p = prepared["dims_p"]
    num_layers = len(weights)

    batch, in_dim = x.shape
    assert in_dim == dims[0], "input feature dim mismatch"
    out_dim = dims[-1]

    # --- Batch tiling (per-generation policy) --------------------------------
    tb = _pick_batch_tile(batch, block_rows)
    batch_p = _round_up(batch, tb)
    grid = (batch_p // tb,)

    # --- Input: single cast-to-bf16 + single pad (both axes at once) ---------
    x_bf = x.astype(jnp.bfloat16)
    pad_b = batch_p - batch
    pad_f = dims_p[0] - in_dim
    if pad_b or pad_f:
        x_bf = jnp.pad(x_bf, ((0, pad_b), (0, pad_f)))

    flat_inputs = [x_bf]
    for w_p, b_p in zip(weights, biases):
        flat_inputs.append(w_p)
        flat_inputs.append(b_p)

    # --- BlockSpecs -----------------------------------------------------------
    in_specs = [pl.BlockSpec((tb, dims_p[0]), lambda i: (i, 0))]
    for li in range(num_layers):
        in_specs.append(_resident_spec((dims_p[li], dims_p[li + 1])))
        in_specs.append(_resident_spec((1, dims_p[li + 1])))
    out_spec = pl.BlockSpec((tb, dims_p[-1]), lambda i: (i, 0))

    # --- VMEM budget: resident params (single-buffered) + pipelined tiles ----
    out_itemsize = jnp.dtype(out_dtype).itemsize
    param_bytes = sum(int(a.size) * a.dtype.itemsize
                      for a in flat_inputs[1:])
    vmem_bytes = param_bytes
    vmem_bytes += 2 * tb * dims_p[0] * 2           # double-buffered bf16 input tiles
    vmem_bytes += 2 * tb * dims_p[-1] * out_itemsize   # double-buffered output tiles
    vmem_bytes += 4 * tb * max(dims_p) * 4         # f32 accumulator / intermediates
    vmem_limit = min(int(vmem_bytes * 1.25) + (2 << 20), 64 << 20)

    # --- Cost estimate hint ---------------------------------------------------
    flops = 2 * sum(batch_p * dims_p[i] * dims_p[i + 1]
                    for i in range(num_layers))
    transcendentals = batch_p * dims_p[-1]         # exp in the final sigmoid
    bytes_accessed = (sum(int(a.size) * a.dtype.itemsize for a in flat_inputs)
                      + batch_p * dims_p[-1] * out_itemsize)

    kernel = functools.partial(_mlp_kernel, num_layers, negative_slope)

    out_p = pl.pallas_call(
        kernel,
        out_shape=jax.ShapeDtypeStruct((batch_p, dims_p[-1]), out_dtype),
        grid_spec=pl.GridSpec(grid=grid, in_specs=in_specs,
                              out_specs=out_spec),
        compiler_params=pltpu.CompilerParams(
            dimension_semantics=("parallel",),
            vmem_limit_bytes=vmem_limit),
        cost_estimate=pl.CostEstimate(flops=flops,
                                      transcendentals=transcendentals,
                                      bytes_accessed=bytes_accessed),
    )(*flat_inputs)

    # Slice off batch / feature padding.
    return out_p[:batch, :out_dim]


# ----------------------------------------------------------------------------
# Init + reference
# ----------------------------------------------------------------------------
def init_generator_params(key, input_dim, out_dim, generator_layersizes):
    """layer_sizes = [input_dim] + generator_layersizes + [out_dim];
    PyTorch-Linear-style U(-1/sqrt(fan_in), 1/sqrt(fan_in)) init."""
    layer_sizes = [input_dim] + list(generator_layersizes) + [out_dim]
    params = []
    for in_size, out_size in zip(layer_sizes[:-1], layer_sizes[1:]):
        key, kw, kb = jax.random.split(key, 3)
        bound = 1.0 / jnp.sqrt(jnp.float32(in_size))
        w = jax.random.uniform(kw, (in_size, out_size), jnp.float32,
                               minval=-bound, maxval=bound)
        b = jax.random.uniform(kb, (out_size,), jnp.float32,
                               minval=-bound, maxval=bound)
        params.append((w, b))
    return params


def _reference_forward(x, params, negative_slope=0.01):
    h = x.astype(jnp.float32)
    for i, (w, b) in enumerate(params):
        h = h @ w.astype(jnp.float32) + b.astype(jnp.float32)
        if i + 1 < len(params):
            h = jnp.where(h > 0, h, negative_slope * h)
        else:
            h = jax.nn.sigmoid(h)
    return h


if __name__ == "__main__":
    key = jax.random.PRNGKey(0)
    k_params, k_x = jax.random.split(key)

    # Small DCGAN-generator-like config.
    input_dim = 32            # latent dim
    generator_layersizes = [64, 48]
    out_dim = 16              # flattened output size
    batch = 8

    params = init_generator_params(k_params, input_dim, out_dim,
                                   generator_layersizes)
    x = jax.random.normal(k_x, (batch, input_dim), jnp.float32)

    prepared = prepare_generator_params(params, input_dim)
    out = generator_forward(x, prepared)
    out = jax.block_until_ready(out)
    assert out.shape == (batch, out_dim)
    assert bool(jnp.all((out >= 0.0) & (out <= 1.0)))

    # Reference uses bf16-rounded weights (kernel stores weights as bf16);
    # tolerance covers bf16 activation rounding between layers.
    params_bf16 = [(w.astype(jnp.bfloat16).astype(jnp.float32), b)
                   for w, b in params]
    ref = _reference_forward(x, params_bf16)
    assert jnp.allclose(out, ref, atol=2e-2, rtol=2e-2), (
        float(jnp.max(jnp.abs(out - ref))))

    print("KERNEL_OK")
</pallas_src>

<mosaic_0001>
module attributes {stable_mosaic.version = 11 : i64} {
  func.func @_mlp_kernel(%arg0: i32, %arg1: memref<8x128xbf16, #tpu.memory_space<vmem>>, %arg2: memref<128x128xbf16, #tpu.memory_space<vmem>>, %arg3: memref<1x128xf32, #tpu.memory_space<vmem>>, %arg4: memref<128x128xbf16, #tpu.memory_space<vmem>>, %arg5: memref<1x128xf32, #tpu.memory_space<vmem>>, %arg6: memref<128x128xbf16, #tpu.memory_space<vmem>>, %arg7: memref<1x128xf32, #tpu.memory_space<vmem>>, %arg8: memref<8x128xf32, #tpu.memory_space<vmem>>) attributes {dimension_semantics = [#tpu.dimension_semantics<parallel>], iteration_bounds = array<i64: 1>, scalar_prefetch = 0 : i64, scratch_operands = 0 : i64, tpu.core_type = #tpu.core_type<tc>, window_params = [{transform_indices = @transform_0, window_bounds = array<i64: 8, 128>}, {pipeline_mode = #tpu.pipeline_mode<synchronous>, transform_indices = @transform_1, window_bounds = array<i64: 128, 128>}, {pipeline_mode = #tpu.pipeline_mode<synchronous>, transform_indices = @transform_2, window_bounds = array<i64: 1, 128>}, {pipeline_mode = #tpu.pipeline_mode<synchronous>, transform_indices = @transform_3, window_bounds = array<i64: 128, 128>}, {pipeline_mode = #tpu.pipeline_mode<synchronous>, transform_indices = @transform_4, window_bounds = array<i64: 1, 128>}, {pipeline_mode = #tpu.pipeline_mode<synchronous>, transform_indices = @transform_5, window_bounds = array<i64: 128, 128>}, {pipeline_mode = #tpu.pipeline_mode<synchronous>, transform_indices = @transform_6, window_bounds = array<i64: 1, 128>}, {transform_indices = @transform_7, window_bounds = array<i64: 8, 128>}]} {
    %c0 = arith.constant 0 : index
    %c0_0 = arith.constant 0 : index
    %0 = vector.load %arg1[%c0, %c0_0] : memref<8x128xbf16, #tpu.memory_space<vmem>>, vector<8x128xbf16>
    %c0_1 = arith.constant 0 : index
    %c0_2 = arith.constant 0 : index
    %1 = vector.load %arg2[%c0_1, %c0_2] : memref<128x128xbf16, #tpu.memory_space<vmem>>, vector<128x128xbf16>
    %c0_3 = arith.constant 0 : index
    %c0_4 = arith.constant 0 : index
    %2 = vector.load %arg3[%c0_3, %c0_4] : memref<1x128xf32, #tpu.memory_space<vmem>>, vector<1x128xf32>
    %cst = arith.constant dense<0.000000e+00> : vector<8x128xf32>
    %3 = tpu.matmul %0, %1, %cst {dimension_numbers = #tpu.dot_dimension_numbers<[1], [0], [0], [1], [0, 0, 1, 1], [], []>} : vector<8x128xbf16>, vector<128x128xbf16>, vector<8x128xf32> -> vector<8x128xf32>
    %4 = vector.broadcast %2 : vector<1x128xf32> to vector<8x128xf32>
    %5 = arith.addf %3, %4 : vector<8x128xf32>
    %6 = arith.truncf %5 : vector<8x128xf32> to vector<8x128xbf16>
    %cst_5 = arith.constant 0.000000e+00 : bf16
    %7 = vector.broadcast %cst_5 : bf16 to vector<8x128xbf16>
    %8 = arith.cmpf ogt, %6, %7 : vector<8x128xbf16>
    %cst_6 = arith.constant 1.000980e-02 : bf16
    %9 = vector.broadcast %cst_6 : bf16 to vector<8x128xbf16>
    %10 = arith.mulf %9, %6 : vector<8x128xbf16>
    %11 = arith.select %8, %6, %10 : vector<8x128xi1>, vector<8x128xbf16>
    %c0_7 = arith.constant 0 : index
    %c0_8 = arith.constant 0 : index
    %12 = vector.load %arg4[%c0_7, %c0_8] : memref<128x128xbf16, #tpu.memory_space<vmem>>, vector<128x128xbf16>
    %c0_9 = arith.constant 0 : index
    %c0_10 = arith.constant 0 : index
    %13 = vector.load %arg5[%c0_9, %c0_10] : memref<1x128xf32, #tpu.memory_space<vmem>>, vector<1x128xf32>
    %cst_11 = arith.constant dense<0.000000e+00> : vector<8x128xf32>
    %14 = tpu.matmul %11, %12, %cst_11 {dimension_numbers = #tpu.dot_dimension_numbers<[1], [0], [0], [1], [0, 0, 1, 1], [], []>} : vector<8x128xbf16>, vector<128x128xbf16>, vector<8x128xf32> -> vector<8x128xf32>
    %15 = vector.broadcast %13 : vector<1x128xf32> to vector<8x128xf32>
    %16 = arith.addf %14, %15 : vector<8x128xf32>
    %17 = arith.truncf %16 : vector<8x128xf32> to vector<8x128xbf16>
    %cst_12 = arith.constant 0.000000e+00 : bf16
    %18 = vector.broadcast %cst_12 : bf16 to vector<8x128xbf16>
    %19 = arith.cmpf ogt, %17, %18 : vector<8x128xbf16>
    %cst_13 = arith.constant 1.000980e-02 : bf16
    %20 = vector.broadcast %cst_13 : bf16 to vector<8x128xbf16>
    %21 = arith.mulf %20, %17 : vector<8x128xbf16>
    %22 = arith.select %19, %17, %21 : vector<8x128xi1>, vector<8x128xbf16>
    %c0_14 = arith.constant 0 : index
    %c0_15 = arith.constant 0 : index
    %23 = vector.load %arg6[%c0_14, %c0_15] : memref<128x128xbf16, #tpu.memory_space<vmem>>, vector<128x128xbf16>
    %c0_16 = arith.constant 0 : index
    %c0_17 = arith.constant 0 : index
    %24 = vector.load %arg7[%c0_16, %c0_17] : memref<1x128xf32, #tpu.memory_space<vmem>>, vector<1x128xf32>
    %cst_18 = arith.constant dense<0.000000e+00> : vector<8x128xf32>
    %25 = tpu.matmul %22, %23, %cst_18 {dimension_numbers = #tpu.dot_dimension_numbers<[1], [0], [0], [1], [0, 0, 1, 1], [], []>} : vector<8x128xbf16>, vector<128x128xbf16>, vector<8x128xf32> -> vector<8x128xf32>
    %26 = vector.broadcast %24 : vector<1x128xf32> to vector<8x128xf32>
    %27 = arith.addf %25, %26 : vector<8x128xf32>
    %cst_19 = arith.constant 0.000000e+00 : f32
    %28 = vector.broadcast %cst_19 : f32 to vector<8x128xf32>
    %29 = arith.subf %28, %27 : vector<8x128xf32>
    %30 = math.exp %29 : vector<8x128xf32>
    %cst_20 = arith.constant 1.000000e+00 : f32
    %31 = vector.broadcast %cst_20 : f32 to vector<8x128xf32>
    %32 = arith.addf %31, %30 : vector<8x128xf32>
    %cst_21 = arith.constant 1.000000e+00 : f32
    %33 = vector.broadcast %cst_21 : f32 to vector<8x128xf32>
    %34 = arith.divf %33, %32 : vector<8x128xf32>
    %c0_22 = arith.constant 0 : index
    %c0_23 = arith.constant 0 : index
    %35 = vector.load %arg8[%c0_22, %c0_23] : memref<8x128xf32, #tpu.memory_space<vmem>>, vector<8x128xf32>
    tpu.vector_store %arg8[%c0_22, %c0_23], %34 {strides = array<i32>} : memref<8x128xf32, #tpu.memory_space<vmem>>, vector<8x128xf32>,
    return
  }
  func.func @transform_0(%arg0: i32) -> (i32, i32) {
    %c0_i32 = arith.constant 0 : i32
    %c0_i32_0 = arith.constant 0 : i32
    return %arg0, %c0_i32 : i32, i32
  }
  func.func @transform_1(%arg0: i32) -> (i32, i32) {
    %c0_i32 = arith.constant 0 : i32
    %c0_i32_0 = arith.constant 0 : i32
    %c0_i32_1 = arith.constant 0 : i32
    return %c0_i32, %c0_i32_0 : i32, i32
  }
  func.func @transform_2(%arg0: i32) -> (i32, i32) {
    %c0_i32 = arith.constant 0 : i32
    %c0_i32_0 = arith.constant 0 : i32
    %c0_i32_1 = arith.constant 0 : i32
    return %c0_i32, %c0_i32_0 : i32, i32
  }
  func.func @transform_3(%arg0: i32) -> (i32, i32) {
    %c0_i32 = arith.constant 0 : i32
    %c0_i32_0 = arith.constant 0 : i32
    %c0_i32_1 = arith.constant 0 : i32
    return %c0_i32, %c0_i32_0 : i32, i32
  }
  func.func @transform_4(%arg0: i32) -> (i32, i32) {
    %c0_i32 = arith.constant 0 : i32
    %c0_i32_0 = arith.constant 0 : i32
    %c0_i32_1 = arith.constant 0 : i32
    return %c0_i32, %c0_i32_0 : i32, i32
  }
  func.func @transform_5(%arg0: i32) -> (i32, i32) {
    %c0_i32 = arith.constant 0 : i32
    %c0_i32_0 = arith.constant 0 : i32
    %c0_i32_1 = arith.constant 0 : i32
    return %c0_i32, %c0_i32_0 : i32, i32
  }
  func.func @transform_6(%arg0: i32) -> (i32, i32) {
    %c0_i32 = arith.constant 0 : i32
    %c0_i32_0 = arith.constant 0 : i32
    %c0_i32_1 = arith.constant 0 : i32
    return %c0_i32, %c0_i32_0 : i32, i32
  }
  func.func @transform_7(%arg0: i32) -> (i32, i32) {
    %c0_i32 = arith.constant 0 : i32
    %c0_i32_0 = arith.constant 0 : i32
    return %arg0, %c0_i32 : i32, i32
  }
}

</mosaic_0001>

<bundles_post_ra>
// kernel: tpu_custom_call.1
= control target key start
LH: loop header
LB: loop body
LE: loop exit
PB: predicated region body
PF: predicated region fallthrough
CT: control target
= control target key end

     0   :  { %12 = vsyncpa [#allocation3], 0  ;;  %s819_s0 = inlined_call_operand.hbm [shape: bf16[8,128], index: 0, kind: input, shape index: {}]   ;;  %s820_s1 = inlined_call_operand.hbm [shape: bf16[128,128], index: 1, kind: input, shape index: {}]   ;;  %s821_s2 = inlined_call_operand.vmem [shape: f32[1,128], index: 2, kind: input, shape index: {}]   ;;  %s822_s3 = inlined_call_operand.hbm [shape: bf16[128,128], index: 3, kind: input, shape index: {}]   ;;  %s823_s4 = inlined_call_operand.vmem [shape: f32[1,128], index: 4, kind: input, shape index: {}]   ;;  %s824_s5 = inlined_call_operand.hbm [shape: bf16[128,128], index: 5, kind: input, shape index: {}]   ;;  %s825_s6 = inlined_call_operand.vmem [shape: f32[1,128], index: 6, kind: input, shape index: {}]   ;;  %s826_s7 = inlined_call_operand.hbm [shape: f32[8,128], index: 7, kind: output, shape index: {}]  }
   0x1   :  { %13 = vsyncpa [#allocation6], 0 }
   0x2   :  { %14 = vsyncpa [#allocation9], 0 }
   0x3   :  { %15 = vsyncpa [#allocation4], 0  ;;  %s707_s24 = smov [#allocation5]  }
   0x4   :  { %s31_s25 = sshll.u32 %s707_s24, 4  ;;  %s32_s25 = int_to_ptr.vmem [resolvable:$true] %s31_s25 }
   0x5   :  { %s607_s26 = scalar_lea.vmem %s32_s25, 1024  ;;  %p612_p1 = scmp.lt.s32.totalorder %s32_s25, %s32_s25 }
   0x6   :  { %p608_p0 = scmp.ne.s32.totalorder %s32_s25, %s607_s26  ;;  %p613_p2 = scmp.lt.s32.totalorder %s607_s26, %s607_s26 }
   0x8   :  { %p614_p3 = por %p613_p2, %p612_p1 }
   0xa   :  { %p615_p4 = pnand %p614_p3, %p608_p0 }
   0xc   :  { %618 = shalt.err (!%p615_p4)
}
   0xd   :  { %s708_s27 = smov 64   ;;  %s709_s28 = smov 4  }
   0xe   :  { %37 = dma.hbm_to_vmem [thread:$0]  %s820_s1, 1024, %s32_s25, [#allocation6], %s708_s27, %s708_s27, %s709_s28  }
   0xf   :  { %s710_s8 = smov [#allocation2]   ;;  %s711_s10 = smov [#allocation7]  }
  0x10   :  { %s22_s9 = sshll.u32 %s710_s8, 4  ;;  %s45_s11 = sshll.u32 %s711_s10, 4  ;;  %s23_s9 = int_to_ptr.vmem [resolvable:$true] %s22_s9  ;;  %s46_s11 = int_to_ptr.vmem [resolvable:$true] %s45_s11 }
  0x11   :  { %s627_s12 = scalar_lea.vmem %s23_s9, 64  ;;  %p632_p6 = scmp.lt.s32.totalorder %s23_s9, %s23_s9 }
  0x12   :  { %p628_p5 = scmp.ne.s32.totalorder %s23_s9, %s627_s12  ;;  %p633_p7 = scmp.lt.s32.totalorder %s627_s12, %s627_s12 }
  0x14   :  { %p634_p8 = por %p633_p7, %p632_p6 }
  0x16   :  { %p635_p9 = pnand %p634_p8, %p628_p5 }
  0x18   :  { %638 = shalt.err (!%p635_p9)
}
  0x19   :  { %25 = dma.hbm_to_vmem [thread:$0]  %s819_s0, 64, %s23_s9, [#allocation3]  }
  0x1a   :  { %s647_s15 = scalar_lea.vmem %s46_s11, 1024  ;;  %p652_p11 = scmp.lt.s32.totalorder %s46_s11, %s46_s11 }
  0x1b   :  { %p648_p10 = scmp.ne.s32.totalorder %s46_s11, %s647_s15  ;;  %p653_p12 = scmp.lt.s32.totalorder %s647_s15, %s647_s15 }
  0x1d   :  { %p654_p13 = por %p653_p12, %p652_p11 }
  0x1f   :  { %p655_p0 = pnand %p654_p13, %p648_p10 }
  0x21   :  { %658 = shalt.err (!%p655_p0)
}
  0x22   :  { %51 = dma.hbm_to_vmem [thread:$0]  %s822_s3, 1024, %s46_s11, [#allocation6], %s708_s27, %s708_s27, %s709_s28  }
  0x23   :  { %s712_s17 = smov [#allocation8]  }
  0x24   :  { %s59_s18 = sshll.u32 %s712_s17, 4  ;;  %s60_s18 = int_to_ptr.vmem [resolvable:$true] %s59_s18 }
  0x25   :  { %s667_s19 = scalar_lea.vmem %s60_s18, 1024  ;;  %p672_p2 = scmp.lt.s32.totalorder %s60_s18, %s60_s18 }
  0x26   :  { %p668_p1 = scmp.ne.s32.totalorder %s60_s18, %s667_s19  ;;  %p673_p3 = scmp.lt.s32.totalorder %s667_s19, %s667_s19 }
  0x28   :  { %p674_p4 = por %p673_p3, %p672_p2 }
  0x2a   :  { %p675_p5 = pnand %p674_p4, %p668_p1 }
  0x2c   :  { %678 = shalt.err (!%p675_p5)
}
  0x2d   :  { %65 = dma.hbm_to_vmem [thread:$0]  %s824_s5, 1024, %s60_s18, [#allocation9], %s708_s27, %s708_s27, %s709_s28  }
  0x2e   :  { %699 = dma.done.wait [#allocation3], 64  }
  0x2f   :  { %700 = vsyncadd [#allocation3], 4294967232 }
  0x30   :  { %701 = dma.done.wait [#allocation6], 2048  }
  0x31   :  { %702 = vsyncadd [#allocation6], 4294965248 }
  0x32   :  { %703 = dma.done.wait [#allocation9], 1024  }
  0x33   :  { %704 = vsyncadd [#allocation9], 4294966272  ;;  %v713_v0 = vmov 0.0   ;;  %vm714_vm0 = vmmov 0   ;;  %v571_v1 = vld [vmem:[#allocation5 + $0x38] sm:$0xff]   ;;  %v572_v2 = vld [vmem:[#allocation5 + $0x30] sm:$0xff]  }
  0x34   :  { %502 = vmatprep.subr.bf16.mxu0 %v713_v0  ;;  %518 = vmatprep.mubr.msk.bf16.mxu0 %vm714_vm0, %v713_v0  ;;  %v573_v3 = vld [vmem:[#allocation5 + $0x28] sm:$0xff]   ;;  %v579_v4 = vld [vmem:[#allocation7 + $0x38] sm:$0xff]   ;;  %v574_v5 = vld [vmem:[#allocation5 + $0x20] sm:$0xff]  }
  0x35   :  { %522 = vmatprep.subr.bf16.mxu1 %v713_v0  ;;  %538 = vmatprep.mubr.msk.bf16.mxu1 %vm714_vm0, %v713_v0  ;;  %v580_v6 = vld [vmem:[#allocation7 + $0x30] sm:$0xff]   ;;  %v575_v7 = vld [vmem:[#allocation5 + $0x18] sm:$0xff]   ;;  %v581_v8 = vld [vmem:[#allocation7 + $0x28] sm:$0xff]  }
  0x36   :  { %503 = vmatpush3.bf16.msra.mxu0 %v571_v1  ;;  %523 = vmatpush3.bf16.msra.mxu1 %v579_v4  ;;  %v576_v9 = vld [vmem:[#allocation5 + $0x10] sm:$0xff]   ;;  %v582_v10 = vld [vmem:[#allocation7 + $0x20] sm:$0xff]   ;;  %v577_v11 = vld [vmem:[#allocation5 + $0x8] sm:$0xff]  }
  0x37   :  { %504 = vmatprep.subr.bf16.mxu0 %v713_v0  ;;  %524 = vmatprep.subr.bf16.mxu1 %v713_v0  ;;  %v583_v12 = vld [vmem:[#allocation7 + $0x18] sm:$0xff]   ;;  %v578_v13 = vld [vmem:[#allocation5] sm:$0xff]   ;;  %v584_v14 = vld [vmem:[#allocation7 + $0x10] sm:$0xff]  }
  0x38   :  { %v82_v15 = vld [vmem:[#allocation2] sm:$0xf]  ;;  %v585_v16 = vld [vmem:[#allocation7 + $0x8] sm:$0xff]   ;;  %v586_v17 = vld [vmem:[#allocation7] sm:$0xff]  }
  0x39   :  { %v587_v18 = vld [vmem:[#allocation8 + $0x38] sm:$0xff]   ;;  %v588_v19 = vld [vmem:[#allocation8 + $0x30] sm:$0xff]   ;;  %v589_v20 = vld [vmem:[#allocation8 + $0x28] sm:$0xff]  }
  0x3a   :  { %505 = vmatpush3.bf16.msra.mxu0 %v572_v2  ;;  %525 = vmatpush3.bf16.msra.mxu1 %v580_v6  ;;  %v590_v21 = vld [vmem:[#allocation8 + $0x20] sm:$0xff]   ;;  %v591_v22 = vld [vmem:[#allocation8 + $0x18] sm:$0xff]   ;;  %v592_v23 = vld [vmem:[#allocation8 + $0x10] sm:$0xff]  }
  0x3b   :  { %506 = vmatprep.subr.bf16.mxu0 %v713_v0  ;;  %526 = vmatprep.subr.bf16.mxu1 %v713_v0  ;;  %v448_v24 = vld [vmem:[%s821_s2] ss:$0 sm:$0xff]  ;;  %v593_v33 = vld [vmem:[#allocation8 + $0x8] sm:$0xff]   ;;  %v594_v34 = vld [vmem:[#allocation8] sm:$0xff]  }
  0x3c   :  { %v457_v35 = vld [vmem:[%s823_s4] ss:$0 sm:$0xff]  ;;  %s715_s4 = smov [#allocation10]  }
  0x3d   :  { %v466_v44 = vld [vmem:[%s825_s6] ss:$0 sm:$0xff]  ;;  %s437_s24 = sshll.u32 %s715_s4, 4  ;;  %s438_s24 = int_to_ptr.vmem [resolvable:$true] %s437_s24 }
  0x3e   :  { %507 = vmatpush3.bf16.msra.mxu0 %v573_v3  ;;  %527 = vmatpush3.bf16.msra.mxu1 %v581_v8  ;;  %s679_s25 = scalar_lea.vmem %s438_s24, 128  ;;  %p684_p7 = scmp.lt.s32.totalorder %s438_s24, %s438_s24 }
  0x3f   :  { %508 = vmatprep.subr.bf16.mxu0 %v713_v0  ;;  %528 = vmatprep.subr.bf16.mxu1 %v713_v0  ;;  %p680_p6 = scmp.ne.s32.totalorder %s438_s24, %s679_s25  ;;  %p685_p8 = scmp.lt.s32.totalorder %s679_s25, %s679_s25 }
  0x41   :  { %p686_p9 = por %p685_p8, %p684_p7 }
  0x42   :  { %509 = vmatpush3.bf16.msra.mxu0 %v574_v5  ;;  %529 = vmatpush3.bf16.msra.mxu1 %v582_v10 }
  0x43   :  { %510 = vmatprep.subr.bf16.mxu0 %v713_v0  ;;  %530 = vmatprep.subr.bf16.mxu1 %v713_v0  ;;  %p687_p10 = pnand %p686_p9, %p680_p6 }
  0x46   :  { %511 = vmatpush3.bf16.msra.mxu0 %v575_v7  ;;  %531 = vmatpush3.bf16.msra.mxu1 %v583_v12 }
  0x47   :  { %512 = vmatprep.subr.bf16.mxu0 %v713_v0  ;;  %532 = vmatprep.subr.bf16.mxu1 %v713_v0 }
  0x4a   :  { %513 = vmatpush3.bf16.msra.mxu0 %v576_v9  ;;  %533 = vmatpush3.bf16.msra.mxu1 %v584_v14 }
  0x4b   :  { %514 = vmatprep.subr.bf16.mxu0 %v713_v0  ;;  %534 = vmatprep.subr.bf16.mxu1 %v713_v0 }
  0x4e   :  { %515 = vmatpush3.bf16.msra.mxu0 %v577_v11  ;;  %535 = vmatpush3.bf16.msra.mxu1 %v585_v16 }
  0x4f   :  { %516 = vmatprep.subr.bf16.mxu0 %v713_v0  ;;  %536 = vmatprep.subr.bf16.mxu1 %v713_v0 }
  0x52   :  { %517 = vmatpush3.bf16.msra.mxu0 %v578_v13  ;;  %537 = vmatpush3.bf16.msra.mxu1 %v586_v17 }
  0x53   :  { %542 = vmatprep.subr.bf16.mxu0 %v713_v0 }
  0x55   :  { %519 = vmatmul.mubr.bf16.vlgmr.msra.gmra.mxu0 %v82_v15 }
  0x56   :  { %558 = vmatprep.mubr.msk.bf16.mxu0 %vm714_vm0, %v713_v0  ;;  %543 = vmatpush3.bf16.msra.mxu0 %v587_v18 }
  0x57   :  { %544 = vmatprep.subr.bf16.mxu0 %v713_v0 }
  0x5a   :  { %545 = vmatpush3.bf16.msra.mxu0 %v588_v19 }
  0x5b   :  { %546 = vmatprep.subr.bf16.mxu0 %v713_v0 }
  0x5e   :  { %547 = vmatpush3.bf16.msra.mxu0 %v589_v20 }
  0x5f   :  { %548 = vmatprep.subr.bf16.mxu0 %v713_v0 }
  0x62   :  { %549 = vmatpush3.bf16.msra.mxu0 %v590_v21 }
  0x63   :  { %550 = vmatprep.subr.bf16.mxu0 %v713_v0 }
  0x66   :  { %551 = vmatpush3.bf16.msra.mxu0 %v591_v22 }
  0x67   :  { %552 = vmatprep.subr.bf16.mxu0 %v713_v0 }
  0x6a   :  { %553 = vmatpush3.bf16.msra.mxu0 %v592_v23 }
  0x6b   :  { %554 = vmatprep.subr.bf16.mxu0 %v713_v0 }
  0x6e   :  { %555 = vmatpush3.bf16.msra.mxu0 %v593_v33 }
  0x6f   :  { %556 = vmatprep.subr.bf16.mxu0 %v713_v0 }
  0x72   :  { %557 = vmatpush3.bf16.msra.mxu0 %v594_v34 }
 0x115   :  { %v188_v25 = vpop.f32.mrf.mxu0 }
 0x116   :  { %v189_v26 = vadd.f32 %v448_v24, %v188_v25 }
 0x117   :  { %v520_v27 = vpop.f32.mrf.mxu0 }
 0x118   :  { %v194_v28 = vpack.c.bf16 %v189_v26, %v189_v26 }
 0x119   :  { %v191_v29 = vpop.f32.mrf.mxu0 }
 0x11a   :  { %v196_v30 = vmul.bf16 1009007652, %v194_v28  ;;  %vm195_vm1 = vcmp.gt.bf16.partialorder %v194_v28, 0 }
 0x11b   :  { %v521_v31 = vpop.f32.mrf.mxu0 }
 0x11c   :  { %v197_v32 = vsel %vm195_vm1, %v194_v28, %v196_v30 }
 0x11d   :  { %539 = vmatmul.mubr.bf16.vlgmr.msra.gmra.mxu1 %v197_v32 }
 0x1dd   :  { %v303_v36 = vpop.f32.mrf.mxu1 }
 0x1de   :  { %v304_v37 = vadd.f32 %v457_v35, %v303_v36 }
 0x1df   :  { %v540_v38 = vpop.f32.mrf.mxu1 }
 0x1e0   :  { %v309_v39 = vpack.c.bf16 %v304_v37, %v304_v37 }
 0x1e1   :  { %v306_v40 = vpop.f32.mrf.mxu1 }
 0x1e2   :  { %vm310_vm2 = vcmp.gt.bf16.partialorder %v309_v39, 0  ;;  %v311_v41 = vmul.bf16 1009007652, %v309_v39 }
 0x1e3   :  { %v541_v42 = vpop.f32.mrf.mxu1 }
 0x1e4   :  { %v312_v43 = vsel %vm310_vm2, %v309_v39, %v311_v41 }
 0x1e5   :  { %559 = vmatmul.mubr.bf16.vlgmr.msra.gmra.mxu0 %v312_v43 }
 0x2a5   :  { %v418_v45 = vpop.f32.mrf.mxu0 }
 0x2a6   :  { %v419_v46 = vadd.f32 %v466_v44, %v418_v45 }
 0x2a7   :  { %v560_v47 = vpop.f32.mrf.mxu0 }
 0x2a8   :  { %v424_v48 = vsub.f32 0.0, %v419_v46 }
 0x2a9   :  { %v421_v49 = vpop.f32.mrf.mxu0 }
 0x2aa   :  { %v425_v50 = vmul.f32 1.442695, %v424_v48 }
 0x2ab   :  { %v561_v51 = vpop.f32.mrf.mxu0 }
 0x2ac   :  { %595 = vpow2.f32 %v425_v50 }
 0x2b9   :  { %v596_v52 = vpop.eup %595 }
 0x2ba   :  { %v427_v53 = vadd.f32 1.0, %v596_v52 }
 0x2bc   :  { %597 = vrcp.f32 %v427_v53 }
 0x2c9   :  { %v598_v54 = vpop.eup %597 }
 0x2ca   :  { %430 = vst [vmem:[#allocation10] sm:$0xff] %v598_v54 }
 0x2cb   :  { %690 = shalt.err (!%p687_p10)
}
 0x2cc   :  { %440 = dma.vmem_to_hbm [thread:$0]  %s438_s24, 128, %s826_s7, [#allocation4]  }
 0x2cd   :  { %705 = dma.done.wait [#allocation4], 128  }
 0x2ce   :  { %706 = vsyncadd [#allocation4], 4294967168 }
 0x2cf   :  { %444 = vsyncpa [#allocation3], 1 }
 0x2d0   :  { %445 = vsyncpa [#allocation6], 1 }
 0x2d1   :  { %446 = vsyncpa [#allocation9], 1 }
 0x2d2   :  { %447 = vsyncpa [#allocation4], 1 }

</bundles_post_ra>
